<compile_context>
chip_gen: v5e
topology: v5e:2x2
jax: 0.10.0
libtpu: 0.0.40
codegen_flags: <defaults>
</compile_context>

<pallas_src>
import jax
import jax.numpy as jnp
from jax.experimental import pallas as pl
from jax.experimental.pallas import tpu as pltpu


def edge_classify_kernel(e_ref, wll_ref, bll_ref, wfbig_ref, bflp_ref, out_ref):
    # e_ref     : (S, Bt*D)      Bt batch elements packed along lanes
    # wll_ref   : (A, S)         nn.Linear(msp_len, max_atoms) weight
    # bll_ref   : (A, 1)         its bias (broadcast over D)
    # wfbig_ref : (Bt*D, Bt*K)   block-diag of the concat-folded fl weight
    # bflp_ref  : (1, Bt*K)      fl bias tiled per batch
    # out_ref   : (1, A, Bt*K)   per-row logits, batch packed along lanes
    e_blk = e_ref[...]                                             # (S, Bt*D)

    # reduce_e for Bt batches at once: (A, S) @ (S, Bt*D) -> (A, Bt*D)
    reduce_e = jnp.dot(wll_ref[...], e_blk,
                       preferred_element_type=jnp.float32)
    reduce_e = reduce_e + bll_ref[...]                             # + (A, 1)

    # fl with the self-concat folded into the weights; block-diagonal weight
    # applies the (D, K) folded matrix independently to each batch's D lanes:
    # (A, Bt*D) @ (Bt*D, Bt*K) -> (A, Bt*K)
    rows = jnp.dot(reduce_e, wfbig_ref[...],
                   preferred_element_type=jnp.float32)
    rows = rows + bflp_ref[...]                                    # + (1, Bt*K)

    out_ref[0] = rows.astype(out_ref.dtype)


def edge_classify(e_output, w_ll, b_ll, w_fl, b_fl, max_atoms, *, batch_tile=8):
    """e_output: (B, msp_len, d_model) float32. Returns (B, A, A, K)."""
    B, S, D = e_output.shape
    A = max_atoms
    K = w_fl.shape[0]
    assert w_ll.shape == (A, S)
    assert w_fl.shape == (K, 2 * D)

    # Fold the duplicated concat: [r, r] @ W_fl^T == r @ (W_fl[:,:D]+W_fl[:,D:])^T
    wf_folded = (w_fl[:, :D] + w_fl[:, D:]).T                      # (D, K)

    # Batch tiling: Bt batches per grid step, padded so the grid divides evenly.
    Bt = min(batch_tile, B)
    Bp = ((B + Bt - 1) // Bt) * Bt
    G = Bp // Bt
    if G > 1:
        assert (Bt * D) % 128 == 0, "batch tile x d_model must be lane-aligned"

    e_pad = e_output if Bp == B else jnp.pad(
        e_output, ((0, Bp - B), (0, 0), (0, 0)))
    # Pack batch into lanes: e2[:, b*D + d] = e_output[b, :, d]
    e2 = jnp.transpose(e_pad, (1, 0, 2)).reshape(S, Bp * D)        # (S, Bp*D)

    # Block-diagonal folded weight so one MXU matmul handles Bt batches.
    wf_big = jnp.kron(jnp.eye(Bt, dtype=wf_folded.dtype), wf_folded)  # (Bt*D, Bt*K)
    bfl_pack = jnp.tile(b_fl, Bt)[None, :]                            # (1, Bt*K)
    bll2 = b_ll.reshape(A, 1)

    rows_packed = pl.pallas_call(
        edge_classify_kernel,
        out_shape=jax.ShapeDtypeStruct((G, A, Bt * K), jnp.float32),
        grid_spec=pltpu.PrefetchScalarGridSpec(
            num_scalar_prefetch=0,
            grid=(G,),
            in_specs=[
                pl.BlockSpec((S, Bt * D), lambda g: (0, g)),
                pl.BlockSpec((A, S), lambda g: (0, 0)),         # weights stay
                pl.BlockSpec((A, 1), lambda g: (0, 0)),         # resident in
                pl.BlockSpec((Bt * D, Bt * K), lambda g: (0, 0)),  # VMEM across
                pl.BlockSpec((1, Bt * K), lambda g: (0, 0)),    # grid steps
            ],
            out_specs=pl.BlockSpec((1, A, Bt * K), lambda g: (g, 0, 0)),
        ),
        compiler_params=pltpu.CompilerParams(
            dimension_semantics=("parallel",)
        ),
    )(e2, w_ll, bll2, wf_big, bfl_pack)

    # Unpack (G, A, Bt*K) -> (B, A, K); broadcast over the j axis in the
    # wrapper instead of writing 8x redundant bytes from the kernel.
    rows = (rows_packed.reshape(G, A, Bt, K)
            .transpose(0, 2, 1, 3)
            .reshape(Bp, A, K)[:B])
    return jnp.broadcast_to(rows[:, :, None, :], (B, A, A, K))


def edge_classify_ref(e_output, w_ll, b_ll, w_fl, b_fl, max_atoms):
    """Pure-JAX reference mirroring the PyTorch forward (no folding)."""
    reduce_e = jnp.einsum("bsd,as->bad", e_output, w_ll) + b_ll[None, :, None]
    x2 = jnp.concatenate([reduce_e, reduce_e], axis=-1)            # (B, A, 2D)
    row = jnp.einsum("bad,kd->bak", x2, w_fl) + b_fl[None, None, :]
    return jnp.broadcast_to(row[:, :, None, :],
                            (row.shape[0], max_atoms, max_atoms, row.shape[2]))


if __name__ == "__main__":
    # Small shapes consistent with the module (batch large enough to give a
    # multi-step grid with batch_tile=8).
    B = 16           # batch
    msp_len = 16     # ll input features (sequence length)
    max_atoms = 8    # ll output features / edge grid size
    d_model = 32     # model width
    num_bonds = 4    # fl output features

    key = jax.random.PRNGKey(0)
    k1, k2, k3, k4, k5 = jax.random.split(key, 5)

    e_output = jax.random.normal(k1, (B, msp_len, d_model), dtype=jnp.float32)

    lim_ll = 1.0 / jnp.sqrt(msp_len)
    w_ll = jax.random.uniform(k2, (max_atoms, msp_len), jnp.float32, -lim_ll, lim_ll)
    b_ll = jax.random.uniform(k3, (max_atoms,), jnp.float32, -lim_ll, lim_ll)

    lim_fl = 1.0 / jnp.sqrt(2 * d_model)
    w_fl = jax.random.uniform(k4, (num_bonds, 2 * d_model), jnp.float32, -lim_fl, lim_fl)
    b_fl = jax.random.uniform(k5, (num_bonds,), jnp.float32, -lim_fl, lim_fl)

    out = edge_classify(e_output, w_ll, b_ll, w_fl, b_fl, max_atoms, batch_tile=8)
    out = jax.block_until_ready(out)

    ref = edge_classify_ref(e_output, w_ll, b_ll, w_fl, b_fl, max_atoms)
    assert out.shape == (B, max_atoms, max_atoms, num_bonds), out.shape
    assert jnp.allclose(out, ref, atol=1e-5, rtol=1e-5), "mismatch vs reference"

    print("KERNEL_OK")
</pallas_src>

<mosaic_0001>
module attributes {stable_mosaic.version = 11 : i64} {
  func.func @edge_classify_kernel(%arg0: i32, %arg1: memref<16x256xf32, #tpu.memory_space<vmem>>, %arg2: memref<8x16xf32, #tpu.memory_space<vmem>>, %arg3: memref<8x1xf32, #tpu.memory_space<vmem>>, %arg4: memref<256x32xf32, #tpu.memory_space<vmem>>, %arg5: memref<1x32xf32, #tpu.memory_space<vmem>>, %arg6: memref<1x8x32xf32, #tpu.memory_space<vmem>>) attributes {dimension_semantics = [#tpu.dimension_semantics<parallel>], iteration_bounds = array<i64: 2>, scalar_prefetch = 0 : i64, scratch_operands = 0 : i64, tpu.core_type = #tpu.core_type<tc>, window_params = [{transform_indices = @transform_0, window_bounds = array<i64: 16, 256>}, {pipeline_mode = #tpu.pipeline_mode<synchronous>, transform_indices = @transform_1, window_bounds = array<i64: 8, 16>}, {pipeline_mode = #tpu.pipeline_mode<synchronous>, transform_indices = @transform_2, window_bounds = array<i64: 8, 1>}, {pipeline_mode = #tpu.pipeline_mode<synchronous>, transform_indices = @transform_3, window_bounds = array<i64: 256, 32>}, {pipeline_mode = #tpu.pipeline_mode<synchronous>, transform_indices = @transform_4, window_bounds = array<i64: 1, 32>}, {transform_indices = @transform_5, window_bounds = array<i64: 1, 8, 32>}]} {
    %c0 = arith.constant 0 : index
    %c0_0 = arith.constant 0 : index
    %0 = vector.load %arg1[%c0, %c0_0] : memref<16x256xf32, #tpu.memory_space<vmem>>, vector<16x256xf32>
    %c0_1 = arith.constant 0 : index
    %c0_2 = arith.constant 0 : index
    %1 = vector.load %arg2[%c0_1, %c0_2] : memref<8x16xf32, #tpu.memory_space<vmem>>, vector<8x16xf32>
    %cst = arith.constant dense<0.000000e+00> : vector<8x256xf32>
    %2 = tpu.matmul %1, %0, %cst {dimension_numbers = #tpu.dot_dimension_numbers<[1], [0], [0], [1], [0, 0, 1, 1], [], []>} : vector<8x16xf32>, vector<16x256xf32>, vector<8x256xf32> -> vector<8x256xf32>
    %c0_3 = arith.constant 0 : index
    %c0_4 = arith.constant 0 : index
    %3 = vector.load %arg3[%c0_3, %c0_4] : memref<8x1xf32, #tpu.memory_space<vmem>>, vector<8x1xf32>
    %4 = vector.broadcast %3 : vector<8x1xf32> to vector<8x256xf32>
    %5 = arith.addf %2, %4 : vector<8x256xf32>
    %c0_5 = arith.constant 0 : index
    %c0_6 = arith.constant 0 : index
    %6 = vector.load %arg4[%c0_5, %c0_6] : memref<256x32xf32, #tpu.memory_space<vmem>>, vector<256x32xf32>
    %cst_7 = arith.constant dense<0.000000e+00> : vector<8x32xf32>
    %7 = tpu.matmul %5, %6, %cst_7 {dimension_numbers = #tpu.dot_dimension_numbers<[1], [0], [0], [1], [0, 0, 1, 1], [], []>} : vector<8x256xf32>, vector<256x32xf32>, vector<8x32xf32> -> vector<8x32xf32>
    %c0_8 = arith.constant 0 : index
    %c0_9 = arith.constant 0 : index
    %8 = vector.load %arg5[%c0_8, %c0_9] : memref<1x32xf32, #tpu.memory_space<vmem>>, vector<1x32xf32>
    %9 = vector.broadcast %8 : vector<1x32xf32> to vector<8x32xf32>
    %10 = arith.addf %7, %9 : vector<8x32xf32>
    %c0_10 = arith.constant 0 : index
    %c0_11 = arith.constant 0 : index
    %c0_12 = arith.constant 0 : index
    %11 = vector.load %arg6[%c0_10, %c0_11, %c0_12] : memref<1x8x32xf32, #tpu.memory_space<vmem>>, vector<1x8x32xf32>
    %12 = vector.shape_cast %11 : vector<1x8x32xf32> to vector<8x32xf32>
    %13 = vector.shape_cast %10 : vector<8x32xf32> to vector<1x8x32xf32>
    tpu.vector_store %arg6[%c0_10, %c0_11, %c0_12], %13 {strides = array<i32>} : memref<1x8x32xf32, #tpu.memory_space<vmem>>, vector<1x8x32xf32>,
    return
  }
  func.func @transform_0(%arg0: i32) -> (i32, i32) {
    %c0_i32 = arith.constant 0 : i32
    %c0_i32_0 = arith.constant 0 : i32
    return %c0_i32, %arg0 : i32, i32
  }
  func.func @transform_1(%arg0: i32) -> (i32, i32) {
    %c0_i32 = arith.constant 0 : i32
    %c0_i32_0 = arith.constant 0 : i32
    %c0_i32_1 = arith.constant 0 : i32
    return %c0_i32, %c0_i32_0 : i32, i32
  }
  func.func @transform_2(%arg0: i32) -> (i32, i32) {
    %c0_i32 = arith.constant 0 : i32
    %c0_i32_0 = arith.constant 0 : i32
    %c0_i32_1 = arith.constant 0 : i32
    return %c0_i32, %c0_i32_0 : i32, i32
  }
  func.func @transform_3(%arg0: i32) -> (i32, i32) {
    %c0_i32 = arith.constant 0 : i32
    %c0_i32_0 = arith.constant 0 : i32
    %c0_i32_1 = arith.constant 0 : i32
    return %c0_i32, %c0_i32_0 : i32, i32
  }
  func.func @transform_4(%arg0: i32) -> (i32, i32) {
    %c0_i32 = arith.constant 0 : i32
    %c0_i32_0 = arith.constant 0 : i32
    %c0_i32_1 = arith.constant 0 : i32
    return %c0_i32, %c0_i32_0 : i32, i32
  }
  func.func @transform_5(%arg0: i32) -> (i32, i32, i32) {
    %c0_i32 = arith.constant 0 : i32
    %c0_i32_0 = arith.constant 0 : i32
    %c0_i32_1 = arith.constant 0 : i32
    return %arg0, %c0_i32, %c0_i32_0 : i32, i32, i32
  }
}

</mosaic_0001>

<bundles_post_ra>
// kernel: tpu_custom_call.1
= control target key start
LH: loop header
LB: loop body
LE: loop exit
PB: predicated region body
PF: predicated region fallthrough
CT: control target
= control target key end

     0   :  { %10 = vsyncpa [#allocation4], 0  ;;  %s817_s0 = inlined_call_operand.vmem [shape: f32[16,512], index: 0, kind: input, shape index: {}]   ;;  %s818_s1 = inlined_call_operand.vmem [shape: f32[8,16], index: 1, kind: input, shape index: {}]   ;;  %s819_s2 = inlined_call_operand.vmem [shape: f32[8,1], index: 2, kind: input, shape index: {}]   ;;  %s820_s3 = inlined_call_operand.vmem [shape: f32[256,32], index: 3, kind: input, shape index: {}]   ;;  %s821_s4 = inlined_call_operand.vmem [shape: f32[1,32], index: 4, kind: input, shape index: {}]   ;;  %s822_s5 = inlined_call_operand.hbm [shape: f32[2,8,32], index: 5, kind: output, shape index: {}]  }
   0x1   :  { %12 = vsyncpa [#allocation4 + $0x1], 0  ;;  %s617_s18 = smov 0   ;;  %s619_s19 = smov 0  }
   0x2   :  { %s621_s20 = smov 0   ;;  %s623_s21 = smov 0  }
   0x3 LB: > { %s463_s22 = sadd.s32 4294967295, %s584_s21   ;;  %s464_s23 = sadd.s32 4294967294, %s584_s21   ;;  %s584_s21 = sphi %s623_s21, %s828_s21   ;;  %s580_s20 = sphi %s621_s20, %s827_s20   ;;  %s576_s19 = sphi %s619_s19, %s826_s19   ;;  %s572_s18 = sphi %s617_s18, %s825_s18  }
   0x4   : > { %s640_s24 = sadd.s32 1, %s584_s21   ;;  %s25_s25 = sadd.s32 1, %s580_s20 }
   0x5   : > { %s22_s26 = ssub.s32 %s584_s21, %s640_s24  ;;  %p32_p0 = scmp.ne.s32.totalorder %s580_s20, %s576_s19 }
   0x6   : > { %p23_p1 = scmp.eq.s32.totalorder %s22_s26, 0  ;;  %p33_p2 = scmp.eq.s32.totalorder %s584_s21, 0 }
   0x7   : > { %p146_p3 = scmp.eq.s32.totalorder %s463_s22, 1  ;;  %p151_p4 = scmp.ne.s32.totalorder %s576_s19, %s572_s18 }
   0x8   : > { %s653_s27 = scalar_select %p23_p1, %s580_s20, %s25_s25  }
   0x9   : > { %p34_p5 = por %p33_p2, %p32_p0  ;;  %p655_p6 = por %p146_p3, %p32_p0 }
   0xa   : > { %p152_p7 = scmp.eq.s32.totalorder %s464_s23, 1  ;;  %p466_p9 = scmp.ge.s32.totalorder %s584_s21, 2 }
   0xc   : > { %p659_p8 = por %p152_p7, %p151_p4  ;;  %180 = sbr.rel (%p466_p9) target bundleno = 25 (0x19), region = 32 }
  0x11   : > { %183 = sbr.rel (!%p34_p5) target bundleno = 25 (0x19), region = 36  ;;  %s185_s30 = sand.u32 (%p34_p5), 1, %s580_s20  }
  0x12   : > { %s479_s6 = sshll.u32 (%p34_p5), %s584_s21, 4  ;;  %s467_s7 = sshll.u32 (%p34_p5), %s185_s30, 5 }
  0x13   : > { %s190_s10 = scalar_lea.vmem (%p34_p5), %s817_s0, %s479_s6  ;;  %s187_s11 = scalar_lea.vmem (%p34_p5), [#allocation2], %s467_s7 }
  0x14   : > { %v203_v0 = vld [vmem:[%s190_s10] sm:$0xff] (%p34_p5)  ;;  %v205_v1 = vld [vmem:[%s190_s10 + $0x8] sm:$0xff] (%p34_p5) }
  0x15   : > { %v207_v2 = vld [vmem:[%s190_s10 + $0x20] sm:$0xff] (%p34_p5)  ;;  %204 = vst [vmem:[%s187_s11] sm:$0xff] (%p34_p5), %v203_v0  ;;  %v209_v3 = vld [vmem:[%s190_s10 + $0x28] sm:$0xff] (%p34_p5) }
  0x16   : > { %206 = vst [vmem:[%s187_s11 + $0x8] sm:$0xff] %v205_v1 }
  0x17   : > { %208 = vst [vmem:[%s187_s11 + $0x10] sm:$0xff] %v207_v2 }
  0x18   : > { %210 = vst [vmem:[%s187_s11 + $0x18] sm:$0xff] %v209_v3 }
  0x19 PF: > { %p470_p10 = scmp.ge.s32.totalorder %s584_s21, 1  ;;  %p215_p11 = scmp.lt.s32.totalorder %s584_s21, 3 }
  0x1b   : > { %p216_p12 = pnand %p470_p10, %p215_p11 }
  0x1c   : > { %s674_s12 = sand.u32 (!%p216_p12), 1, %s576_s19   ;;  %s476_s8 = sshll.u32 (!%p216_p12), %s463_s22, 3 }
  0x1d   : > { %219 = sbr.rel (%p216_p12) target bundleno = 307 (0x133), region = 59  ;;  %s471_s17 = sshll.u32 (!%p216_p12), %s674_s12, 5 }
  0x1e   : > { %s224_s10 = scalar_lea.vmem (!%p216_p12), [#allocation2], %s471_s17  ;;  %s472_s7 = sshll.u32 (!%p216_p12), %s674_s12, 3 }
  0x1f   : > { %s394_s14 = scalar_lea.hbm (!%p216_p12), %s822_s5, %s476_s8  ;;  %s248_s15 = scalar_lea.vmem (!%p216_p12), [#allocation3], %s472_s7 }
  0x20   : > { %s396_s16 = sshll.u32 (!%p216_p12), %s248_s15, 4  ;;  %s398_s17 = sshll.u32 (!%p216_p12), %s394_s14, 4  ;;  %s397_s16 = int_to_ptr.vmem [resolvable:$true] %s396_s16  ;;  %s399_s17 = int_to_ptr.hbm [resolvable:$true] %s398_s17 }
  0x21   : > { %s384_s22 = scalar_lea.sflag (!%p216_p12), [#allocation4], %s674_s12  ;;  %s536_s23 = sshra.s32 (!%p216_p12), %s399_s17, 4  ;;  %s537_s23 = int_to_ptr.hbm [resolvable:$true] %s536_s23 }
  0x22   : > { %v255_v4 = vld [vmem:[%s819_s2] sm:$0xff]  ;;  %v320_v5 = vld [vmem:[%s820_s3 + $0x78] sm:$0xff]  ;;  %v586_v6 = vmov 0   ;;  %v319_v8 = vld [vmem:[%s820_s3 + $0x70] sm:$0xff]  ;;  %vm261_vm0 = vcmask 130048   ;;  %vm381_vm1 = vcmask 261120   ;;  %p543_p2 = scmp.lt.s32.totalorder %s537_s23, %s822_s5 }
  0x23   : > { %520 = vset.pattern.permute.xlu0 %v586_v6  ;;  %341 = vmatpush.msra.mxu2 %v320_v5  ;;  %v336_v7 = vld [vmem:[%s820_s3 + $0xf8] sm:$0xff]  ;;  %v335_v9 = vld [vmem:[%s820_s3 + $0xf0] sm:$0xff]  ;;  %v318_v10 = vld [vmem:[%s820_s3 + $0x68] sm:$0xff]  ;;  %s538_s25 = scalar_lea.hbm %s537_s23, 8  ;;  %s542_s6 = scalar_lea.hbm %s822_s5, 16 }
  0x24   : > { %258 = vperm.xlu0 %520, %v255_v4   ;;  %361 = vmatpush.msra.mxu3 %v336_v7  ;;  %v252_v11 = vld [vmem:[%s224_s10 + $0x10] sm:$0xff]  ;;  %v253_v12 = vld [vmem:[%s224_s10 + $0x18] sm:$0xff]  ;;  %v250_v13 = vld [vmem:[%s224_s10] sm:$0xff]  ;;  %p539_p13 = scmp.ne.s32.totalorder %s537_s23, %s538_s25  ;;  %p544_p3 = scmp.lt.s32.totalorder %s542_s6, %s538_s25 }
  0x25   : > { %342 = vmatpush.msra.mxu2 %v319_v8  ;;  %279 = vmatpush.msra.mxu0 %v252_v11  ;;  %v251_v14 = vld [vmem:[%s224_s10 + $0x8] sm:$0xff]  ;;  %v254_v15 = vld [vmem:[%s818_s1] sm:$0xff]  ;;  %v316_v19 = vld [vmem:[%s820_s3 + $0x58] sm:$0xff] }
  0x26   : > { %299 = vmatpush.msra.mxu1 %v253_v12  ;;  %362 = vmatpush.msra.mxu3 %v335_v9  ;;  %v334_v16 = vld [vmem:[%s820_s3 + $0xe8] sm:$0xff]  ;;  %v317_v17 = vld [vmem:[%s820_s3 + $0x60] sm:$0xff]  ;;  %v332_v20 = vld [vmem:[%s820_s3 + $0xd8] sm:$0xff]  ;;  %p540_p0 = pnand %p539_p13, %p655_p6  ;;  %p545_p4 = por %p544_p3, %p543_p2 }
  0x27   : > { %343 = vmatpush.msra.mxu2 %v318_v10  ;;  %280 = vmatpush.msra.mxu0 %v250_v13  ;;  %v333_v18 = vld [vmem:[%s820_s3 + $0xe0] sm:$0xff]  ;;  %v315_v21 = vld [vmem:[%s820_s3 + $0x50] sm:$0xff]  ;;  %v314_v23 = vld [vmem:[%s820_s3 + $0x48] sm:$0xff] }
  0x28   : > { %300 = vmatpush.msra.mxu1 %v251_v14  ;;  %473 = vmatmul.msk.f32.vlgmr.msra.gmra.mxu0 %vm261_vm0, %v254_v15  ;;  %v331_v22 = vld [vmem:[%s820_s3 + $0xd0] sm:$0xff]  ;;  %v330_v24 = vld [vmem:[%s820_s3 + $0xc8] sm:$0xff]  ;;  %v313_v25 = vld [vmem:[%s820_s3 + $0x40] sm:$0xff]  ;;  %p541_p1 = pneg %p540_p0 }
  0x29   : > { %474 = vmatmul.msk.f32.vlgmr.msra.gmra.mxu1 %vm261_vm0, %v254_v15  ;;  %363 = vmatpush.msra.mxu3 %v334_v16  ;;  %v329_v26 = vld [vmem:[%s820_s3 + $0xc0] sm:$0xff]  ;;  %v312_v27 = vld [vmem:[%s820_s3 + $0x38] sm:$0xff]  ;;  %v311_v29 = vld [vmem:[%s820_s3 + $0x30] sm:$0xff] }
  0x2a   : > { %344 = vmatpush.msra.mxu2 %v317_v17  ;;  %v328_v28 = vld [vmem:[%s820_s3 + $0xb8] sm:$0xff]  ;;  %v327_v30 = vld [vmem:[%s820_s3 + $0xb0] sm:$0xff]  ;;  %v310_v31 = vld [vmem:[%s820_s3 + $0x28] sm:$0xff]  ;;  %p546_p5 = pnand %p545_p4, %p541_p1 }
  0x2b   : > { %364 = vmatpush.msra.mxu3 %v333_v18  ;;  %v326_v32 = vld [vmem:[%s820_s3 + $0xa8] sm:$0xff]  ;;  %v309_v33 = vld [vmem:[%s820_s3 + $0x20] sm:$0xff]  ;;  %v308_v35 = vld [vmem:[%s820_s3 + $0x18] sm:$0xff] }
  0x2c   : > { %345 = vmatpush.msra.mxu2 %v316_v19  ;;  %v325_v34 = vld [vmem:[%s820_s3 + $0xa0] sm:$0xff]  ;;  %v324_v36 = vld [vmem:[%s820_s3 + $0x98] sm:$0xff]  ;;  %v307_v37 = vld [vmem:[%s820_s3 + $0x10] sm:$0xff] }
  0x2d   : > { %365 = vmatpush.msra.mxu3 %v332_v20  ;;  %v323_v38 = vld [vmem:[%s820_s3 + $0x90] sm:$0xff]  ;;  %v306_v39 = vld [vmem:[%s820_s3 + $0x8] sm:$0xff]  ;;  %v305_v41 = vld [vmem:[%s820_s3] sm:$0xff] }
  0x2e   : > { %346 = vmatpush.msra.mxu2 %v315_v21  ;;  %v322_v40 = vld [vmem:[%s820_s3 + $0x88] sm:$0xff]  ;;  %v321_v42 = vld [vmem:[%s820_s3 + $0x80] sm:$0xff] }
  0x2f   : > { %366 = vmatpush.msra.mxu3 %v331_v22  ;;  %v521_v48 = vld [vmem:[%s821_s4] ss:$0 sm:$0xff] }
  0x30   : > { %347 = vmatpush.msra.mxu2 %v314_v23 }
  0x31   : > { %367 = vmatpush.msra.mxu3 %v330_v24 }
  0x32   : > { %348 = vmatpush.msra.mxu2 %v313_v25 }
  0x33   : > { %368 = vmatpush.msra.mxu3 %v329_v26 }
  0x34   : > { %349 = vmatpush.msra.mxu2 %v312_v27 }
  0x35   : > { %369 = vmatpush.msra.mxu3 %v328_v28 }
  0x36   : > { %350 = vmatpush.msra.mxu2 %v311_v29 }
  0x37   : > { %370 = vmatpush.msra.mxu3 %v327_v30 }
  0x38   : > { %351 = vmatpush.msra.mxu2 %v310_v31 }
  0x39   : > { %371 = vmatpush.msra.mxu3 %v326_v32 }
  0x3a   : > { %352 = vmatpush.msra.mxu2 %v309_v33 }
  0x3b   : > { %372 = vmatpush.msra.mxu3 %v325_v34 }
  0x3c   : > { %353 = vmatpush.msra.mxu2 %v308_v35 }
  0x3d   : > { %373 = vmatpush.msra.mxu3 %v324_v36 }
  0x3e   : > { %354 = vmatpush.msra.mxu2 %v307_v37 }
  0x3f   : > { %374 = vmatpush.msra.mxu3 %v323_v38 }
  0x40   : > { %355 = vmatpush.msra.mxu2 %v306_v39 }
  0x41   : > { %375 = vmatpush.msra.mxu3 %v322_v40 }
  0x42   : > { %356 = vmatpush.msra.mxu2 %v305_v41 }
  0x43   : > { %376 = vmatpush.msra.mxu3 %v321_v42 }
  0x96   : > { %v259_v43 = vpop.permute.xlu0 %258 }
  0xa5   : > { %v282_v44 = vpop.f32.mrf.mxu0 }
  0xa6   : > { %v302_v45 = vpop.f32.mrf.mxu1  ;;  %v283_v46 = vadd.f32 %v282_v44, %v259_v43 }
  0xa7   : > { %v303_v47 = vadd.f32 %v302_v45, %v259_v43 }
  0xa8   : > { %357 = vmatmul.f32.vlgmr.msra.gmra.mxu2 %v283_v46 }
  0xa9   : > { %377 = vmatmul.f32.vlgmr.msra.gmra.mxu3 %v303_v47 }
 0x12b   : > { %v358_v49 = vpop.f32.mrf.mxu2 }
 0x12c   : > { %v359_v50 = vadd.f32 %v521_v48, %v358_v49  ;;  %v378_v51 = vpop.f32.mrf.mxu3 }
 0x12e   : > { %v379_v52 = vadd.f32 %v378_v51, %v359_v50 }
 0x130   : > { %382 = vst.msk [vmem:[%s248_s15] sm:$0xff] %vm381_vm1, %v379_v52 }
 0x131   : > { %549 = shalt.err (!%p546_p5)
}
 0x132   : > { %480 = dma.vmem_to_hbm [thread:$0]  (%p655_p6), %s397_s16, 128, %s399_s17, %s384_s22  }
 0x133 PF: > { %s410_s12 = sand.u32 1, %s572_s18   ;;  %p483_p7 = pnand %p466_p9, %p659_p8 }
 0x134   : > { %s411_s9 = scalar_lea.sflag [#allocation4], %s410_s12 }
 0x135   : > { %p484_p10 = pneg %p483_p7 }
 0x137   : > { %567 = dma.done.wait (%p484_p10), %s411_s9, 128  }
 0x138   : > { %569 = vsyncadd (%p484_p10), %s411_s9, 4294967168  ;;  %p15_p11 = scmp.ge.s32.totalorder %s640_s24, 4   ;;  %s825_s18 = smov %s576_s19 }
 0x139   : > { %s826_s19 = smov %s580_s20  ;;  %s827_s20 = smov %s653_s27 }
 0x13a   : > { %s828_s21 = smov %s640_s24  ;;  %17 = sbr.rel (!%p15_p11) target bundleno = 3 (0x3), region = 103 }
 0x13f   :  { %417 = vsyncpa [#allocation4], 1 }
 0x140   :  { %419 = vsyncpa [#allocation4 + $0x1], 1 }

</bundles_post_ra>
